<compile_context>
chip_gen: v7x
topology: tpu7x:2x2x1
jax: 0.10.0
libtpu: 0.0.40
codegen_flags: <defaults>
</compile_context>

<pallas_src>
import jax
import jax.numpy as jnp
from jax.experimental import pallas as pl
from jax.experimental.pallas import tpu as pltpu


def predictor_kernel(param_ref, x_ref, o_ref):
    # param_ref: (num_demos, 4)  -- constant across the grid (same block every step)
    # x_ref:     (tb, num_demos) -- one batch tile of x, natural row-major layout
    # o_ref:     (tb, 4)
    p = param_ref[...].astype(jnp.float32)
    p = p - jnp.max(p, axis=-1, keepdims=True)        # numerically-stable softmax
    e = jnp.exp(p)                                     # EUP (hidden under DMA)
    sm = e / jnp.sum(e, axis=-1, keepdims=True)        # exact divide (free here)
    # MXU: (tb, num_demos) @ (num_demos, 4) -> (tb, 4), f32 accumulate.
    o_ref[...] = jnp.dot(
        x_ref[...].astype(jnp.float32), sm, preferred_element_type=jnp.float32
    )


def _choose_tb(B, num_demos, *, tile_bytes=4 << 20, min_grid=2):
    """Pick a batch tile: multi-MB x tiles, >= min_grid steps for large B."""
    if B <= 256:
        return B  # single full-extent block; fine for toy shapes
    row_bytes = 4 * num_demos
    tb = max(128, (tile_bytes // row_bytes) // 128 * 128)
    # Cap so the grid has at least `min_grid` steps (v7x: keep both TensorCores busy).
    cap = max(128, (B // min_grid) // 128 * 128)
    return min(tb, cap)


def predictor_forward(x, param, *, tb=None, tile_bytes=4 << 20):
    """x: (B, num_demos) f32, param: (num_demos, 4) f32 -> (B, 2, 2) f32."""
    B, num_demos = x.shape
    assert param.shape == (num_demos, 4)

    if tb is None:
        tb = _choose_tb(B, num_demos, tile_bytes=tile_bytes)
    tb = min(tb, B)
    grid = (pl.cdiv(B, tb),)

    # Double-buffered x tile + double-buffered output tile + param + slack.
    vmem_bytes = 2 * (4 * num_demos * tb) + 2 * (4 * 4 * tb) + 4 * num_demos * 4
    vmem_limit = min(96 << 20, max(int(vmem_bytes) + (4 << 20), 16 << 20))

    cost = pl.CostEstimate(
        flops=8 * B * num_demos,                                   # 2*B*nd*4
        bytes_accessed=4 * B * num_demos + 16 * B + 16 * num_demos,
        transcendentals=4 * num_demos * grid[0],                   # exp per step
    )

    out = pl.pallas_call(
        predictor_kernel,
        out_shape=jax.ShapeDtypeStruct((B, 4), jnp.float32),
        grid=grid,
        in_specs=[
            # param is constant across the grid (same block index every step ->
            # Pallas skips the re-DMA).
            pl.BlockSpec((num_demos, 4), lambda i: (0, 0)),
            # Stream batch tiles of x in its natural (B, num_demos) layout.
            pl.BlockSpec((tb, num_demos), lambda i: (i, 0)),
        ],
        out_specs=pl.BlockSpec((tb, 4), lambda i: (i, 0)),
        compiler_params=pltpu.CompilerParams(
            dimension_semantics=("parallel",),   # v7x: shard batch tiles over 2 TCs
            vmem_limit_bytes=vmem_limit,
        ),
        cost_estimate=cost,
    )(param, x)

    # Pure reshape (no transpose) -- matches torch .reshape((-1, 2, 2)).
    return out.reshape((-1, 2, 2))


if __name__ == "__main__":
    key = jax.random.PRNGKey(0)
    k_param, k_x, k_x2 = jax.random.split(key, 3)

    num_demos = 32   # hidden size consistent with Predictor(num_demos)
    B = 8            # small batch for the functional check

    # Deterministic stand-ins for torch.randn
    param = jax.random.normal(k_param, (num_demos, 4), dtype=jnp.float32)
    x = jax.random.normal(k_x, (B, num_demos), dtype=jnp.float32)

    y = predictor_forward(x, param)
    jax.block_until_ready(y)

    ref = (x @ jax.nn.softmax(param, axis=-1)).reshape((-1, 2, 2))
    assert y.shape == (B, 2, 2)
    assert jnp.allclose(y, ref, atol=1e-5, rtol=1e-5)

    # Second check exercising the multi-step pipelined path (grid > 1) with a
    # still-small batch; tb forced to 128 to get 3 grid steps.
    B2 = 384
    x2 = jax.random.normal(k_x2, (B2, num_demos), dtype=jnp.float32)
    y2 = predictor_forward(x2, param, tb=128)
    jax.block_until_ready(y2)
    ref2 = (x2 @ jax.nn.softmax(param, axis=-1)).reshape((-1, 2, 2))
    assert y2.shape == (B2, 2, 2)
    assert jnp.allclose(y2, ref2, atol=1e-5, rtol=1e-5)

    print("KERNEL_OK")
</pallas_src>

<mosaic_0001>
module attributes {stable_mosaic.version = 11 : i64} {
  func.func @predictor_kernel(%arg0: i32, %arg1: memref<32x4xf32, #tpu.memory_space<vmem>>, %arg2: memref<8x32xf32, #tpu.memory_space<vmem>>, %arg3: memref<8x4xf32, #tpu.memory_space<vmem>>) attributes {dimension_semantics = [#tpu.dimension_semantics<parallel>], iteration_bounds = array<i64: 1>, scalar_prefetch = 0 : i64, scratch_operands = 0 : i64, tpu.core_type = #tpu.core_type<tc>, window_params = [{pipeline_mode = #tpu.pipeline_mode<synchronous>, transform_indices = @transform_0, window_bounds = array<i64: 32, 4>}, {transform_indices = @transform_1, window_bounds = array<i64: 8, 32>}, {transform_indices = @transform_2, window_bounds = array<i64: 8, 4>}]} {
    %c0 = arith.constant 0 : index
    %c0_0 = arith.constant 0 : index
    %0 = vector.load %arg1[%c0, %c0_0] : memref<32x4xf32, #tpu.memory_space<vmem>>, vector<32x4xf32>
    %cst = arith.constant dense<0xFF800000> : vector<32xf32>
    %1 = vector.multi_reduction <maximumf>, %0, %cst [1] : vector<32x4xf32> to vector<32xf32>
    %2 = vector.shape_cast %1 : vector<32xf32> to vector<32x1xf32>
    %3 = vector.broadcast %2 : vector<32x1xf32> to vector<32x4xf32>
    %4 = arith.subf %0, %3 : vector<32x4xf32>
    %5 = math.exp %4 : vector<32x4xf32>
    %cst_1 = arith.constant dense<0.000000e+00> : vector<32xf32>
    %6 = vector.multi_reduction <add>, %5, %cst_1 [1] : vector<32x4xf32> to vector<32xf32>
    %7 = vector.shape_cast %6 : vector<32xf32> to vector<32x1xf32>
    %8 = vector.broadcast %7 : vector<32x1xf32> to vector<32x4xf32>
    %9 = arith.divf %5, %8 : vector<32x4xf32>
    %c0_2 = arith.constant 0 : index
    %c0_3 = arith.constant 0 : index
    %10 = vector.load %arg2[%c0_2, %c0_3] : memref<8x32xf32, #tpu.memory_space<vmem>>, vector<8x32xf32>
    %cst_4 = arith.constant dense<0.000000e+00> : vector<8x4xf32>
    %11 = tpu.matmul %10, %9, %cst_4 {dimension_numbers = #tpu.dot_dimension_numbers<[1], [0], [0], [1], [0, 0, 1, 1], [], []>} : vector<8x32xf32>, vector<32x4xf32>, vector<8x4xf32> -> vector<8x4xf32>
    %c0_5 = arith.constant 0 : index
    %c0_6 = arith.constant 0 : index
    %12 = vector.load %arg3[%c0_5, %c0_6] : memref<8x4xf32, #tpu.memory_space<vmem>>, vector<8x4xf32>
    tpu.vector_store %arg3[%c0_5, %c0_6], %11 {strides = array<i32>} : memref<8x4xf32, #tpu.memory_space<vmem>>, vector<8x4xf32>,
    return
  }
  func.func @transform_0(%arg0: i32) -> (i32, i32) {
    %c0_i32 = arith.constant 0 : i32
    %c0_i32_0 = arith.constant 0 : i32
    %c0_i32_1 = arith.constant 0 : i32
    return %c0_i32, %c0_i32_0 : i32, i32
  }
  func.func @transform_1(%arg0: i32) -> (i32, i32) {
    %c0_i32 = arith.constant 0 : i32
    %c0_i32_0 = arith.constant 0 : i32
    return %arg0, %c0_i32 : i32, i32
  }
  func.func @transform_2(%arg0: i32) -> (i32, i32) {
    %c0_i32 = arith.constant 0 : i32
    %c0_i32_0 = arith.constant 0 : i32
    return %arg0, %c0_i32 : i32, i32
  }
}

</mosaic_0001>

<bundles_post_ra>
// kernel: tpu_custom_call.1
= control target key start
LH: loop header
LB: loop body
LE: loop exit
PB: predicated region body
PF: predicated region fallthrough
CT: control target
= control target key end

     0   :  { %vm15_vm0 = vcmask 31744   ;;  %v182_v28 = vmov 0.0|0.0   ;;  %vm183_vm1 = vmmov 0   ;;  %v184_v29 = vmov 0.0   ;;  %s227_s0 = inlined_call_operand.vmem [shape: f32[32,4], index: 0, kind: input, shape index: {}]   ;;  %s228_s1 = inlined_call_operand.vmem [shape: f32[8,32], index: 1, kind: input, shape index: {}]   ;;  %s229_s2 = inlined_call_operand.vmem [shape: f32[8,4], index: 2, kind: output, shape index: {}]  }
   0x1   :  { %v11_v0 = vld [vmem:[%s227_s0] sm:$0xff]  ;;  %v13_v1 = vld [vmem:[%s227_s0 + $0x10] sm:$0xff]  ;;  %v12_v2 = vld [vmem:[%s227_s0 + $0x8] sm:$0xff]  ;;  %157 = vmatprep.subr.bf16.mxu0 %v182_v28  ;;  %154 = vmatprep.mubr.msk.f32.mxu0 %vm183_vm1, %v184_v29  ;;  %vm61_vm2 = vcmask 261120  }
   0x2   :  { %v16_v3 = vsel %vm15_vm0, %v11_v0, -inf  ;;  %v22_v4 = vsel %vm15_vm0, %v13_v1, -inf  ;;  %v14_v5 = vld [vmem:[%s227_s0 + $0x18] sm:$0xff]  ;;  %v19_v6 = vsel %vm15_vm0, %v12_v2, -inf  ;;  %v60_v44 = vld [vmem:[%s228_s1] sm:$0xff] }
   0x3   :  { %17 = vmax.xlane.f32.xlu0 %v16_v3  ;;  %23 = vmax.xlane.f32.xlu1 %v22_v4  ;;  %v25_v7 = vsel %vm15_vm0, %v14_v5, -inf }
   0x7   :  { %20 = vmax.xlane.f32.xlu0 %v19_v6  ;;  %26 = vmax.xlane.f32.xlu1 %v25_v7 }
  0x90   :  { %v18_v8 = vpop.xlane.xlu0 %17  ;;  %v24_v9 = vpop.xlane.xlu1 %23 }
  0x91   :  { %v28_v10 = vsub.f32 %v11_v0, %v18_v8  ;;  %v30_v11 = vsub.f32 %v13_v1, %v24_v9 }
  0x93   :  { %v32_v12 = vmul.f32 1.442695, %v28_v10  ;;  %v36_v13 = vmul.f32 1.442695, %v30_v11 }
  0x94   :  { %v21_v14 = vpop.xlane.xlu0 %20  ;;  %v27_v15 = vpop.xlane.xlu1 %26 }
  0x95   :  { %166 = vpow2.f32 %v32_v12  ;;  %v29_v16 = vsub.f32 %v12_v2, %v21_v14  ;;  %v31_v17 = vsub.f32 %v14_v5, %v27_v15 }
  0x96   :  { %168 = vpow2.f32 %v36_v13 }
  0x97   :  { %v34_v18 = vmul.f32 1.442695, %v29_v16  ;;  %v38_v19 = vmul.f32 1.442695, %v31_v17 }
  0x99   :  { %170 = vpow2.f32 %v34_v18 }
  0x9a   :  { %172 = vpow2.f32 %v38_v19 }
  0x9f   :  { %v167_v20 = vpop.eup %166 }
  0xa0   :  { %v169_v21 = vpop.eup %168  ;;  %v40_v22 = vsel %vm15_vm0, %v167_v20, 0.0 }
  0xa1   :  { %41 = vadd.xlane.f32.xlu0 %v40_v22  ;;  %v46_v23 = vsel %vm15_vm0, %v169_v21, 0.0 }
  0xa3   :  { %v171_v24 = vpop.eup %170 }
  0xa4   :  { %v173_v25 = vpop.eup %172  ;;  %v43_v26 = vsel %vm15_vm0, %v171_v24, 0.0 }
  0xa5   :  { %47 = vadd.xlane.f32.xlu0 %v46_v23  ;;  %44 = vadd.xlane.f32.xlu1 %v43_v26  ;;  %v49_v27 = vsel %vm15_vm0, %v173_v25, 0.0 }
  0xa9   :  { %50 = vadd.xlane.f32.xlu1 %v49_v27 }
 0x12e   :  { %v42_v30 = vpop.xlane.xlu0 %41 }
 0x12f   :  { %174 = vrcp.f32 %v42_v30 }
 0x132   :  { %v45_v31 = vpop.xlane.xlu1 %44  ;;  %v48_v32 = vpop.xlane.xlu0 %47 }
 0x133   :  { %176 = vrcp.f32 %v45_v31 }
 0x134   :  { %178 = vrcp.f32 %v48_v32 }
 0x136   :  { %v51_v33 = vpop.xlane.xlu1 %50 }
 0x137   :  { %180 = vrcp.f32 %v51_v33 }
 0x139   :  { %v175_v34 = vpop.eup %174 }
 0x13a   :  { %v53_v36 = vmul.f32 %v175_v34, %v167_v20 }
 0x13d   :  { %v177_v35 = vpop.eup %176 }
 0x13e   :  { %v55_v37 = vmul.f32 %v177_v35, %v171_v24  ;;  %v179_v38 = vpop.eup %178 }
 0x13f   :  { %v57_v41 = vmul.f32 %v179_v38, %v169_v21 }
 0x140   :  { %v158_v39 = vpack.c.bf16 %v55_v37, %v53_v36 }
 0x141   :  { %v181_v40 = vpop.eup %180 }
 0x142   :  { %159 = vmatpush3.bf16.msra.mxu0 %v158_v39  ;;  %v59_v42 = vmul.f32 %v181_v40, %v173_v25 }
 0x143   :  { %160 = vmatprep.subr.bf16.mxu0 %v182_v28 }
 0x144   :  { %v161_v43 = vpack.c.bf16 %v59_v42, %v57_v41 }
 0x146   :  { %162 = vmatpush3.bf16.msra.mxu0 %v161_v43 }
 0x149   :  { %155 = vmatmul.mubr.msk.f32.vlgmr.msra.gmra.mrb[0].mxu0 %vm61_vm2, %v60_v44 }
 0x21c   :  { %v131_v45 = vpop.f32.mrb[0].mxu0 }
 0x21d   :  { %135 = vst.msk [vmem:[%s229_s2] sm:$0xff] %vm15_vm0, %v131_v45  ;;  %v156_v46 = vpop.f32.mrb[1].mxu0 }

</bundles_post_ra>
